<compile_context>
chip_gen: v7x
topology: tpu7x:2x2x1
jax: 0.10.0
libtpu: 0.0.40
codegen_flags: <defaults>
</compile_context>

<pallas_src>
import functools

import jax
import jax.numpy as jnp
from jax.experimental import pallas as pl
from jax.experimental.pallas import tpu as pltpu

LANE = 128  # TPU lane width: pad channel/class dims to this for lane-dense stores.


def _round_up(x, m):
    return (x + m - 1) // m * m


def _pick_spatial_tile(hw, k_dim, cf_pad, vmem_budget=8 * 1024 * 1024):
    """Largest spatial tile that divides H*W and stays well inside VMEM.

    Per-step VMEM ~= 2 (double-buffer) * ts*k*2B (bf16 patches) + ts*cf_pad*4B (f32
    conv activations).  Budget leaves ample headroom under the v7x 32 MiB scoped limit.
    """
    for ts in (1024, 512, 256, 128, 64, 32, 16, 8):
        if hw % ts == 0 and (2 * ts * k_dim * 2 + ts * cf_pad * 4) <= vmem_budget:
            return ts
    return hw


# ----------------------------------------------------------------------------
# im2col glue (plain JAX data movement; not hot compute at these sizes)
# ----------------------------------------------------------------------------
def im2col_3x3(x_nhwc):
    B, H, W, C = x_nhwc.shape
    xp = jnp.pad(x_nhwc, ((0, 0), (1, 1), (1, 1), (0, 0)))
    taps = [xp[:, dh:dh + H, dw:dw + W, :] for dh in range(3) for dw in range(3)]
    patches = jnp.stack(taps, axis=3)                 # (B, H, W, 9, C)
    return patches.reshape(B, H * W, 9 * C)           # tap-major, channel-minor


# ----------------------------------------------------------------------------
# Fused kernel: conv-as-matmul + ReLU -> GAP accumulate -> (clip) + fc at finalize
# ----------------------------------------------------------------------------
def _make_fused_kernel(inv_hw, use_clip):
    def kernel(thr_ref, patches_ref, wconv_ref, bconv_ref, wfc_ref, bfc_ref,
               out_ref, gap_ref):
        s = pl.program_id(1)

        @pl.when(s == 0)
        def _():
            gap_ref[...] = jnp.zeros_like(gap_ref)

        # conv3x3 as matmul on this im2col spatial tile (bf16 operands, f32 accumulate)
        p = patches_ref[0]                                           # (TS, K) bf16
        acc = jnp.dot(p, wconv_ref[...], preferred_element_type=jnp.float32)
        acc = jnp.maximum(acc + bconv_ref[...], 0.0)                 # bias + ReLU in f32

        # global average pool: accumulate spatial sum; divide once at finalize
        gap_ref[...] += jnp.sum(acc, axis=0, keepdims=True)          # (1, CF_PAD)

        @pl.when(s == pl.num_programs(1) - 1)
        def _():
            feat = gap_ref[...] * inv_hw                             # (1, CF_PAD)
            if use_clip:                # trace-time specialization: forward() skips this
                feat = jnp.minimum(feat, thr_ref[0])                 # ReAct clip
            logits = jnp.dot(feat, wfc_ref[...],
                             preferred_element_type=jnp.float32) + bfc_ref[...]
            out_ref[0] = logits.astype(out_ref.dtype)                # (1, NC_PAD)

    return kernel


def _fused_reactnet_call(thr, patches, wconv, bconv, wfc, bfc, *, hw, ts, use_clip):
    B, HW, K = patches.shape
    CF_PAD = wconv.shape[1]
    NC_PAD = wfc.shape[1]
    n_s = HW // ts

    kernel = _make_fused_kernel(1.0 / float(hw), use_clip)

    flops = 2 * B * HW * K * CF_PAD + 2 * B * CF_PAD * NC_PAD
    bytes_accessed = (B * HW * K * 2          # bf16 patches
                      + K * CF_PAD * 2        # bf16 conv weight
                      + CF_PAD * 4 + CF_PAD * NC_PAD * 4 + NC_PAD * 4
                      + B * NC_PAD * 4)       # lane-dense f32 logits
    cost = pl.CostEstimate(flops=flops, transcendentals=0,
                           bytes_accessed=bytes_accessed)

    out = pl.pallas_call(
        kernel,
        out_shape=jax.ShapeDtypeStruct((B, 1, NC_PAD), jnp.float32),
        grid=(B, n_s),
        in_specs=[
            # scalar threshold lives in SMEM (read only when use_clip)
            pl.BlockSpec(memory_space=pltpu.MemorySpace.SMEM),
            # spatial-tiled im2col patches (double-buffered HBM->VMEM pipeline)
            pl.BlockSpec((1, ts, K), lambda b, s: (b, s, 0)),
            # weights / biases: full, lane-padded, resident across the grid
            pl.BlockSpec((K, CF_PAD), lambda b, s: (0, 0)),
            pl.BlockSpec((1, CF_PAD), lambda b, s: (0, 0)),
            pl.BlockSpec((CF_PAD, NC_PAD), lambda b, s: (0, 0)),
            pl.BlockSpec((1, NC_PAD), lambda b, s: (0, 0)),
        ],
        # lane-dense (128-wide) output, same block across the spatial axis (written
        # only at the last spatial step)
        out_specs=pl.BlockSpec((1, 1, NC_PAD), lambda b, s: (b, 0, 0)),
        scratch_shapes=[pltpu.VMEM((1, CF_PAD), jnp.float32)],  # GAP accumulator
        compiler_params=pltpu.CompilerParams(
            dimension_semantics=("parallel", "arbitrary"),
            vmem_limit_bytes=32 * 1024 * 1024,
        ),
        cost_estimate=cost,
    )(thr, patches, wconv, bconv, wfc, bfc)
    return out.reshape(B, NC_PAD)


@functools.partial(jax.jit, static_argnames=("use_clip", "num_classes"))
def _reactnet_apply(x_nchw, w_conv_mat, b_conv, w_fc, b_fc, thr, use_clip, num_classes):
    B, C, H, W = x_nchw.shape
    x_nhwc = jnp.transpose(x_nchw, (0, 2, 3, 1))
    patches = im2col_3x3(x_nhwc).astype(jnp.bfloat16)        # (B, H*W, 9*C)
    ts = _pick_spatial_tile(H * W, patches.shape[-1], w_conv_mat.shape[1])
    logits_pad = _fused_reactnet_call(thr, patches, w_conv_mat, b_conv, w_fc, b_fc,
                                      hw=H * W, ts=ts, use_clip=use_clip)
    return logits_pad[:, :num_classes]


# ----------------------------------------------------------------------------
# ReactNet wrapper (synthetic backbone + fc), lane-padded parameters
# ----------------------------------------------------------------------------
class ReactNetPallas:
    def __init__(self, key, c_in=4, c_feat=32, num_classes=10):
        k1, k2, k3, k4 = jax.random.split(key, 4)
        self.c_in, self.c_feat, self.num_classes = c_in, c_feat, num_classes
        self.cf_pad = _round_up(c_feat, LANE)
        self.nc_pad = _round_up(num_classes, LANE)
        k_dim = 9 * c_in

        # conv weight in PyTorch layout (C_out, C_in, 3, 3) -> (9*C_in, C_feat) matmul
        # layout (tap-major, channel-minor, matching im2col), zero-padded to 128 lanes.
        w_conv = jax.random.normal(k1, (c_feat, c_in, 3, 3), jnp.float32) * 0.1
        b_conv = jax.random.normal(k2, (c_feat,), jnp.float32) * 0.1
        w_conv_mat = jnp.transpose(w_conv, (2, 3, 1, 0)).reshape(k_dim, c_feat)
        self.w_conv_mat = (jnp.zeros((k_dim, self.cf_pad), jnp.bfloat16)
                           .at[:, :c_feat].set(w_conv_mat.astype(jnp.bfloat16)))
        self.b_conv = (jnp.zeros((1, self.cf_pad), jnp.float32)
                       .at[0, :c_feat].set(b_conv))

        # fc: PyTorch nn.Linear weight (num_classes, c_feat) -> (CF_PAD, NC_PAD).
        # Padded feature rows are zero, so clipping the zero-padded GAP lanes (which can
        # become `threshold` when threshold < 0) cannot leak into the logits.
        w_fc = jax.random.normal(k3, (num_classes, c_feat), jnp.float32) * 0.1
        b_fc = jax.random.normal(k4, (num_classes,), jnp.float32) * 0.1
        self.w_fc = (jnp.zeros((self.cf_pad, self.nc_pad), jnp.float32)
                     .at[:c_feat, :num_classes].set(jnp.transpose(w_fc, (1, 0))))
        self.b_fc = (jnp.zeros((1, self.nc_pad), jnp.float32)
                     .at[0, :num_classes].set(b_fc))

    def forward(self, x_nchw):
        # plain forward: clip-free kernel body (trace-time specialized); thr is unused.
        return _reactnet_apply(x_nchw, self.w_conv_mat, self.b_conv, self.w_fc,
                               self.b_fc, jnp.zeros((1,), jnp.float32),
                               use_clip=False, num_classes=self.num_classes)

    def forward_threshold(self, x_nchw, threshold):
        thr = jnp.asarray([threshold], dtype=jnp.float32)
        return _reactnet_apply(x_nchw, self.w_conv_mat, self.b_conv, self.w_fc,
                               self.b_fc, thr,
                               use_clip=True, num_classes=self.num_classes)


# ----------------------------------------------------------------------------
# Pure-JAX reference (same padded params) for a tolerance check
# ----------------------------------------------------------------------------
def _reference(net, x_nchw, threshold=None):
    x_nhwc = jnp.transpose(x_nchw, (0, 2, 3, 1))
    patches = im2col_3x3(x_nhwc)                                      # f32
    conv = jnp.maximum(
        jnp.einsum("bsk,kf->bsf", patches,
                   net.w_conv_mat.astype(jnp.float32)) + net.b_conv, 0.0)
    feat = jnp.mean(conv, axis=1)                                     # (B, CF_PAD)
    if threshold is not None:
        feat = jnp.minimum(feat, jnp.float32(threshold))
    logits = feat @ net.w_fc + net.b_fc
    return logits[:, :net.num_classes]


if __name__ == "__main__":
    key = jax.random.PRNGKey(0)
    kx, kp = jax.random.split(key)
    B, C, H, W = 2, 4, 16, 16
    x = jax.random.normal(kx, (B, C, H, W), jnp.float32)

    net = ReactNetPallas(kp, c_in=C, c_feat=32, num_classes=10)

    logits = net.forward(x)
    logits_thr = net.forward_threshold(x, 1.0)
    jax.block_until_ready(logits)
    jax.block_until_ready(logits_thr)

    assert logits.shape == (B, 10)
    assert logits_thr.shape == (B, 10)

    ref = _reference(net, x, threshold=None)
    ref_thr = _reference(net, x, threshold=1.0)
    assert jnp.allclose(logits, ref, atol=2e-2, rtol=2e-2)
    assert jnp.allclose(logits_thr, ref_thr, atol=2e-2, rtol=2e-2)

    print("KERNEL_OK")
</pallas_src>

<mosaic_0001>
module attributes {stable_mosaic.version = 11 : i64} {
  func.func @kernel(%arg0: i32, %arg1: i32, %arg2: memref<1xf32, #tpu.memory_space<smem>>, %arg3: memref<1x256x36xbf16, #tpu.memory_space<vmem>>, %arg4: memref<36x128xbf16, #tpu.memory_space<vmem>>, %arg5: memref<1x128xf32, #tpu.memory_space<vmem>>, %arg6: memref<128x128xf32, #tpu.memory_space<vmem>>, %arg7: memref<1x128xf32, #tpu.memory_space<vmem>>, %arg8: memref<1x1x128xf32, #tpu.memory_space<vmem>>, %arg9: memref<1x128xf32, #tpu.memory_space<vmem>>) attributes {dimension_semantics = [#tpu.dimension_semantics<parallel>, #tpu.dimension_semantics<arbitrary>], iteration_bounds = array<i64: 2, 1>, scalar_prefetch = 0 : i64, scratch_operands = 1 : i64, tpu.core_type = #tpu.core_type<tc>, window_params = [{transform_indices = @transform_0, window_bounds = array<i64: 1>}, {transform_indices = @transform_1, window_bounds = array<i64: 1, 256, 36>}, {pipeline_mode = #tpu.pipeline_mode<synchronous>, transform_indices = @transform_2, window_bounds = array<i64: 36, 128>}, {pipeline_mode = #tpu.pipeline_mode<synchronous>, transform_indices = @transform_3, window_bounds = array<i64: 1, 128>}, {pipeline_mode = #tpu.pipeline_mode<synchronous>, transform_indices = @transform_4, window_bounds = array<i64: 128, 128>}, {pipeline_mode = #tpu.pipeline_mode<synchronous>, transform_indices = @transform_5, window_bounds = array<i64: 1, 128>}, {transform_indices = @transform_6, window_bounds = array<i64: 1, 1, 128>}]} {
    %c0_i32 = arith.constant 0 : i32
    %0 = arith.cmpi eq, %arg1, %c0_i32 : i32
    %1 = arith.extui %0 : i1 to i32
    %c0_i32_0 = arith.constant 0 : i32
    %2 = arith.cmpi ne, %1, %c0_i32_0 : i32
    scf.if %2 {
      %cst_15 = arith.constant 0.000000e+00 : f32
      %20 = vector.broadcast %cst_15 : f32 to vector<1x128xf32>
      %c0_16 = arith.constant 0 : index
      %c0_17 = arith.constant 0 : index
      %21 = vector.load %arg9[%c0_16, %c0_17] : memref<1x128xf32, #tpu.memory_space<vmem>>, vector<1x128xf32>
      tpu.vector_store %arg9[%c0_16, %c0_17], %20 {strides = array<i32>} : memref<1x128xf32, #tpu.memory_space<vmem>>, vector<1x128xf32>,
    } else {
    }
    %c0 = arith.constant 0 : index
    %c0_1 = arith.constant 0 : index
    %c0_2 = arith.constant 0 : index
    %3 = vector.load %arg3[%c0, %c0_1, %c0_2] : memref<1x256x36xbf16, #tpu.memory_space<vmem>>, vector<1x256x36xbf16>
    %4 = vector.shape_cast %3 : vector<1x256x36xbf16> to vector<256x36xbf16>
    %c0_3 = arith.constant 0 : index
    %c0_4 = arith.constant 0 : index
    %5 = vector.load %arg4[%c0_3, %c0_4] : memref<36x128xbf16, #tpu.memory_space<vmem>>, vector<36x128xbf16>
    %cst = arith.constant dense<0.000000e+00> : vector<256x128xf32>
    %6 = tpu.matmul %4, %5, %cst {dimension_numbers = #tpu.dot_dimension_numbers<[1], [0], [0], [1], [0, 0, 1, 1], [], []>} : vector<256x36xbf16>, vector<36x128xbf16>, vector<256x128xf32> -> vector<256x128xf32>
    %c0_5 = arith.constant 0 : index
    %c0_6 = arith.constant 0 : index
    %7 = vector.load %arg5[%c0_5, %c0_6] : memref<1x128xf32, #tpu.memory_space<vmem>>, vector<1x128xf32>
    %8 = vector.broadcast %7 : vector<1x128xf32> to vector<256x128xf32>
    %9 = arith.addf %6, %8 : vector<256x128xf32>
    %cst_7 = arith.constant 0.000000e+00 : f32
    %10 = vector.broadcast %cst_7 : f32 to vector<256x128xf32>
    %11 = arith.maximumf %9, %10 : vector<256x128xf32>
    %c0_8 = arith.constant 0 : index
    %c0_9 = arith.constant 0 : index
    %12 = vector.load %arg9[%c0_8, %c0_9] : memref<1x128xf32, #tpu.memory_space<vmem>>, vector<1x128xf32>
    %cst_10 = arith.constant dense<0.000000e+00> : vector<128xf32>
    %13 = vector.multi_reduction <add>, %11, %cst_10 [0] : vector<256x128xf32> to vector<128xf32>
    %14 = vector.shape_cast %13 : vector<128xf32> to vector<1x128xf32>
    %15 = arith.addf %12, %14 : vector<1x128xf32>
    %c0_11 = arith.constant 0 : index
    %c0_12 = arith.constant 0 : index
    %16 = vector.load %arg9[%c0_11, %c0_12] : memref<1x128xf32, #tpu.memory_space<vmem>>, vector<1x128xf32>
    tpu.vector_store %arg9[%c0_11, %c0_12], %15 {strides = array<i32>} : memref<1x128xf32, #tpu.memory_space<vmem>>, vector<1x128xf32>,
    %c0_i32_13 = arith.constant 0 : i32
    %17 = arith.cmpi eq, %arg1, %c0_i32_13 : i32
    %18 = arith.extui %17 : i1 to i32
    %c0_i32_14 = arith.constant 0 : i32
    %19 = arith.cmpi ne, %18, %c0_i32_14 : i32
    scf.if %19 {
      %c0_15 = arith.constant 0 : index
      %c0_16 = arith.constant 0 : index
      %20 = vector.load %arg9[%c0_15, %c0_16] : memref<1x128xf32, #tpu.memory_space<vmem>>, vector<1x128xf32>
      %cst_17 = arith.constant 3.906250e-03 : f32
      %21 = vector.broadcast %cst_17 : f32 to vector<1x128xf32>
      %22 = arith.mulf %20, %21 : vector<1x128xf32>
      %c0_18 = arith.constant 0 : index
      %c0_19 = arith.constant 0 : index
      %23 = vector.load %arg6[%c0_18, %c0_19] : memref<128x128xf32, #tpu.memory_space<vmem>>, vector<128x128xf32>
      %cst_20 = arith.constant dense<0.000000e+00> : vector<1x128xf32>
      %24 = tpu.matmul %22, %23, %cst_20 {dimension_numbers = #tpu.dot_dimension_numbers<[1], [0], [0], [1], [0, 0, 1, 1], [], []>} : vector<1x128xf32>, vector<128x128xf32>, vector<1x128xf32> -> vector<1x128xf32>
      %c0_21 = arith.constant 0 : index
      %c0_22 = arith.constant 0 : index
      %25 = vector.load %arg7[%c0_21, %c0_22] : memref<1x128xf32, #tpu.memory_space<vmem>>, vector<1x128xf32>
      %26 = arith.addf %24, %25 : vector<1x128xf32>
      %c0_23 = arith.constant 0 : index
      %c0_24 = arith.constant 0 : index
      %c0_25 = arith.constant 0 : index
      %27 = vector.load %arg8[%c0_23, %c0_24, %c0_25] : memref<1x1x128xf32, #tpu.memory_space<vmem>>, vector<1x1x128xf32>
      %28 = vector.shape_cast %27 : vector<1x1x128xf32> to vector<1x128xf32>
      %29 = vector.shape_cast %26 : vector<1x128xf32> to vector<1x1x128xf32>
      tpu.vector_store %arg8[%c0_23, %c0_24, %c0_25], %29 {strides = array<i32>} : memref<1x1x128xf32, #tpu.memory_space<vmem>>, vector<1x1x128xf32>,
    } else {
    }
    return
  }
  func.func @transform_0(%arg0: i32, %arg1: i32) -> i32 {
    %c0_i32 = arith.constant 0 : i32
    %c0_i32_0 = arith.constant 0 : i32
    return %c0_i32 : i32
  }
  func.func @transform_1(%arg0: i32, %arg1: i32) -> (i32, i32, i32) {
    %c0_i32 = arith.constant 0 : i32
    %c0_i32_0 = arith.constant 0 : i32
    return %arg0, %arg1, %c0_i32 : i32, i32, i32
  }
  func.func @transform_2(%arg0: i32, %arg1: i32) -> (i32, i32) {
    %c0_i32 = arith.constant 0 : i32
    %c0_i32_0 = arith.constant 0 : i32
    %c0_i32_1 = arith.constant 0 : i32
    return %c0_i32, %c0_i32_0 : i32, i32
  }
  func.func @transform_3(%arg0: i32, %arg1: i32) -> (i32, i32) {
    %c0_i32 = arith.constant 0 : i32
    %c0_i32_0 = arith.constant 0 : i32
    %c0_i32_1 = arith.constant 0 : i32
    return %c0_i32, %c0_i32_0 : i32, i32
  }
  func.func @transform_4(%arg0: i32, %arg1: i32) -> (i32, i32) {
    %c0_i32 = arith.constant 0 : i32
    %c0_i32_0 = arith.constant 0 : i32
    %c0_i32_1 = arith.constant 0 : i32
    return %c0_i32, %c0_i32_0 : i32, i32
  }
  func.func @transform_5(%arg0: i32, %arg1: i32) -> (i32, i32) {
    %c0_i32 = arith.constant 0 : i32
    %c0_i32_0 = arith.constant 0 : i32
    %c0_i32_1 = arith.constant 0 : i32
    return %c0_i32, %c0_i32_0 : i32, i32
  }
  func.func @transform_6(%arg0: i32, %arg1: i32) -> (i32, i32, i32) {
    %c0_i32 = arith.constant 0 : i32
    %c0_i32_0 = arith.constant 0 : i32
    %c0_i32_1 = arith.constant 0 : i32
    return %arg0, %c0_i32, %c0_i32_0 : i32, i32, i32
  }
}

</mosaic_0001>

<bundles_post_ra>
// kernel: _reactnet_apply.1
= control target key start
LH: loop header
LB: loop body
LE: loop exit
PB: predicated region body
PF: predicated region fallthrough
CT: control target
= control target key end

     0   :  { %12 = vsyncpa [#allocation5], 0  ;;  %s1529_s0 = inlined_call_operand.<no memory space> [shape: f32[1], index: 0, kind: input, shape index: {}]   ;;  %s1530_s1 = inlined_call_operand.vmem [shape: bf16[2,256,36], index: 1, kind: input, shape index: {}]   ;;  %s1531_s2 = inlined_call_operand.vmem [shape: bf16[36,128], index: 2, kind: input, shape index: {}]   ;;  %s1532_s3 = inlined_call_operand.vmem [shape: f32[1,128], index: 3, kind: input, shape index: {}]   ;;  %s1533_s4 = inlined_call_operand.vmem [shape: f32[128,128], index: 4, kind: input, shape index: {}]   ;;  %s1534_s5 = inlined_call_operand.vmem [shape: f32[1,128], index: 5, kind: input, shape index: {}]   ;;  %s1535_s6 = inlined_call_operand.hbm [shape: f32[2,1,128], index: 6, kind: output, shape index: {}]  }
   0x1   :  { %14 = vsyncpa [#allocation5 + $0x1], 0  ;;  %s1268_s0 = smov 0   ;;  %s1270_s21 = smov 0  }
   0x2   :  { %s1272_s22 = smov 0   ;;  %s1274_s23 = smov 0  }
   0x3   :  { %s1276_s24 = smov 0   ;;  %s1278_s25 = smov 0  }
   0x4 LB: > { %s884_s26 = sadd.s32 4294967295, %s1227_s25   ;;  %s885_s27 = sadd.s32 4294967294, %s1227_s25   ;;  %s1227_s25 = sphi %s1278_s25, %s20_s25   ;;  %s1223_s24 = sphi %s1276_s24, %s1542_s24   ;;  %s1219_s23 = sphi %s1274_s23, %s1541_s23   ;;  %s1215_s22 = sphi %s1272_s22, %s1540_s22   ;;  %s1211_s21 = sphi %s1270_s21, %s1539_s21   ;;  %s1207_s0 = sphi %s1268_s0, %s1538_s0  }
   0x5   : > { %s32_s28 = sadd.s32 1, %s1223_s24  ;;  %s172_s29 = sadd.s32 1, %s1215_s22 }
   0x6   : > { %p34_p0 = scmp.ge.s32.totalorder %s32_s28, 2  ;;  %p182_p1 = scmp.ne.s32.totalorder %s1215_s22, %s1211_s21 }
   0x7   : > { %p183_p2 = scmp.eq.s32.totalorder %s884_s26, 1  ;;  %p188_p3 = scmp.ne.s32.totalorder %s1211_s21, %s1207_s0 }
   0x8   : > { %s1544_s28 = smov (%p34_p0, %s32_s28), 0  ;;  %p189_p5 = scmp.eq.s32.totalorder %s885_s27, 1 }
   0x9   : > { %p1308_p4 = por %p183_p2, %p182_p1  ;;  %s169_s7 = ssub.s32 %s1223_s24, %s1544_s28 }
   0xa   : > { %p888_p6 = scmp.ge.s32.totalorder %s1227_s25, 1  ;;  %p170_p7 = scmp.eq.s32.totalorder %s169_s7, 0 }
   0xb   : > { %p1315_p8 = por %p189_p5, %p188_p3  ;;  %p235_p9 = scmp.lt.s32.totalorder %s1227_s25, 3 }
   0xc   : > { %s1321_s9 = scalar_select %p170_p7, %s1215_s22, %s172_s29  }
   0xd   : > { %p236_p10 = pnand %p888_p6, %p235_p9 }
   0xe   : > { %v1130_v0 = vld [vmem:[%s1531_s2] sm:$0xff] (!%p236_p10)   ;;  %v1131_v1 = vld [vmem:[%s1531_s2 + $0x8] sm:$0xff] (!%p236_p10)   ;;  %p269_p11 = scmp.lt.s32.totalorder (!%p236_p10), %s1219_s23, 1  ;;  %v1132_v2 = vld [vmem:[%s1531_s2 + $0x10] ss:$0 sps:$4 sm:$0x33] (!%p236_p10)  }
   0xf   : > { %239 = sbr.rel (%p236_p10) target bundleno = 561 (0x231), region = 44  ;;  %967 = vmatprep.subr.bf16.mxu0 (!%p236_p10), %v1130_v0  ;;  %1064 = vmatprep.subr.bf16.mxu1 (!%p236_p10), %v1130_v0  ;;  %vm472_vm0 = vcmask (!%p236_p10), 1041408   ;;  %vm423_vm1 = vcmask (!%p236_p10), 293888   ;;  %v714_v20 = vld [vmem:[%s1533_s4] sm:$0xff] (!%p236_p10)  ;;  %v715_v21 = vld [vmem:[%s1533_s4 + $0x8] sm:$0xff] (!%p236_p10)  ;;  %v1229_v23 = vmov (!%p236_p10), 0.0|0.0  }
  0x10   : > { %968 = vmatpush3.bf16.msra.mxu0 (!%p236_p10), %v1130_v0  ;;  %1067 = vmatpush3.bf16.msra.mxu1 (!%p236_p10), %v1130_v0  ;;  %v474_v4 = vsel (!%p236_p10), %vm472_vm0, %v1132_v2, 0  ;;  %v1041_v22 = vpack.c.bf16 (!%p236_p10), %v715_v21, %v714_v20  ;;  %v716_v24 = vld [vmem:[%s1533_s4 + $0x10] sm:$0xff] (!%p236_p10)  ;;  %v717_v25 = vld [vmem:[%s1533_s4 + $0x18] sm:$0xff] (!%p236_p10)  ;;  %v718_v27 = vld [vmem:[%s1533_s4 + $0x20] sm:$0xff] (!%p236_p10)  ;;  %v1230_v33 = vmov (!%p236_p10), 0.0   ;;  %vm1231_vm2 = vmmov (!%p236_p10), 0  }
  0x11   : > { %969 = vmatprep.subr.bf16.mxu0 (!%p236_p10), %v1131_v1  ;;  %1065 = vmatprep.subr.bf16.mxu1 (!%p236_p10), %v1131_v1  ;;  %v1044_v26 = vpack.c.bf16 (!%p236_p10), %v717_v25, %v716_v24  ;;  %v719_v28 = vld [vmem:[%s1533_s4 + $0x28] sm:$0xff] (!%p236_p10)  ;;  %v720_v30 = vld [vmem:[%s1533_s4 + $0x30] sm:$0xff] (!%p236_p10)  ;;  %v721_v31 = vld [vmem:[%s1533_s4 + $0x38] sm:$0xff] (!%p236_p10)  ;;  %283 = vst [vmem:[#allocation2] sm:$0x1] (!%p236_p10), %v1230_v33  ;;  %s266_s10 = sand.u32 (!%p236_p10), 1, %s1211_s21  }
  0x12   : > { %v1047_v29 = vpack.c.bf16 (!%p236_p10), %v719_v28, %v718_v27  ;;  %v1050_v32 = vpack.c.bf16 (!%p236_p10), %v721_v31, %v720_v30  ;;  %v722_v34 = vld [vmem:[%s1533_s4 + $0x40] sm:$0xff] (!%p236_p10)  ;;  %v723_v35 = vld [vmem:[%s1533_s4 + $0x48] sm:$0xff] (!%p236_p10)  ;;  %v724_v37 = vld [vmem:[%s1533_s4 + $0x50] sm:$0xff] (!%p236_p10)  ;;  %s927_s13 = sshll.u32 (!%p236_p10), %s1219_s23, 4  ;;  %s803_s19 = scalar_lea.sflag (!%p236_p10), [#allocation5], %s266_s10 }
  0x13   : > { %v1053_v36 = vpack.c.bf16 (!%p236_p10), %v723_v35, %v722_v34  ;;  %v725_v38 = vld [vmem:[%s1533_s4 + $0x58] sm:$0xff] (!%p236_p10)  ;;  %v726_v40 = vld [vmem:[%s1533_s4 + $0x60] sm:$0xff] (!%p236_p10)  ;;  %v727_v41 = vld [vmem:[%s1533_s4 + $0x68] sm:$0xff] (!%p236_p10)  ;;  %s1482_s18 = scalar_lea.hbm (!%p236_p10), %s1535_s6, %s927_s13 }
  0x14   : > { %970 = vmatpush3.bf16.msra.mxu0 (!%p236_p10), %v1131_v1  ;;  %1068 = vmatpush3.bf16.msra.mxu1 (!%p236_p10), %v1131_v1  ;;  %v1056_v39 = vpack.c.bf16 (!%p236_p10), %v725_v38, %v724_v37  ;;  %v1059_v42 = vpack.c.bf16 (!%p236_p10), %v727_v41, %v726_v40  ;;  %v728_v43 = vld [vmem:[%s1533_s4 + $0x70] sm:$0xff] (!%p236_p10)  ;;  %v729_v44 = vld [vmem:[%s1533_s4 + $0x78] sm:$0xff] (!%p236_p10)  ;;  %v1422_v46 = vld [vmem:[%s1532_s3] ss:$0 sm:$0xff] (!%p236_p10) }
  0x15   : > { %1070 = vmatprep.subr.msk.bf16.mxu0 (!%p236_p10), %vm472_vm0, %v1132_v2  ;;  %1071 = vmatprep.subr.msk.bf16.mxu1 (!%p236_p10), %vm472_vm0, %v1132_v2  ;;  %v1062_v45 = vpack.c.bf16 (!%p236_p10), %v729_v44, %v728_v43 }
  0x16   : > { %s270_s14 = scalar_select %p269_p11, %s1219_s23, 1 }
  0x17   : > { %s1232_s23 = smov [#allocation4]  }
  0x18   : > { %s930_s17 = sshll.u32 %s270_s14, 7  ;;  %972 = vmatpush3.bf16.msra.mxu0 %v474_v4  ;;  %1069 = vmatpush3.bf16.msra.mxu1 %v474_v4  ;;  %s267_s14 = scalar_lea.vmem [#allocation4], %s266_s10 }
  0x19   : > { %s1337_s20 = scalar_lea.vmem %s1530_s1, %s930_s17  ;;  %1040 = vmatprep.subr.bf16.mxu1 %v1229_v23  ;;  %s815_s15 = sshll.u32 %s267_s14, 4  ;;  %s1484_s15 = int_to_ptr.vmem [resolvable:$true] %s815_s15 }
  0x1a   : > { %v1133_v3 = vld [vmem:[%s1337_s20] sm:$0xff]   ;;  %v1134_v5 = vld [vmem:[%s1337_s20 + $0x8] sm:$0xff]   ;;  %v1135_v6 = vld [vmem:[%s1337_s20 + $0x10] sm:$0xff]   ;;  %s1153_s26 = sshll.u32 %s1232_s23, 4  ;;  %s1154_s26 = int_to_ptr.vmem [resolvable:$false] %s1153_s26 }
  0x1b   : > { %973 = vmatprep.mubr.msk.bf16.mxu0 %vm423_vm1, %v1133_v3  ;;  %v1141_v7 = vld [vmem:[%s1337_s20 + $0x40] sm:$0xff]   ;;  %v1142_v8 = vld [vmem:[%s1337_s20 + $0x48] sm:$0xff]   ;;  %v1143_v9 = vld [vmem:[%s1337_s20 + $0x50] sm:$0xff]   ;;  %s1155_s27 = scalar_lea.vmem %s1154_s26, 32  ;;  %p1156_p1 = scmp.lt.s32.totalorder %s1484_s15, %s1154_s26 }
  0x1c   : > { %974 = vmatmul.mubr.msk.bf16.vlgmr.msra.gmra.mrb[0].mxu0 %vm423_vm1, %v1134_v5  ;;  %989 = vmatprep.mubr.msk.bf16.mxu1 %vm423_vm1, %v1141_v7  ;;  %v1136_v10 = vld [vmem:[%s1337_s20 + $0x18] sm:$0xff]   ;;  %v1137_v11 = vld [vmem:[%s1337_s20 + $0x20] sm:$0xff]   ;;  %v1138_v14 = vld [vmem:[%s1337_s20 + $0x28] sm:$0xff]  }
  0x1d   : > { %977 = vmatprep.mubr.msk.bf16.mxu0 %vm423_vm1, %v1135_v6  ;;  %990 = vmatmul.mubr.msk.bf16.vlgmr.msra.gmra.mrb[0].mxu1 %vm423_vm1, %v1142_v8  ;;  %v1144_v12 = vld [vmem:[%s1337_s20 + $0x58] sm:$0xff]   ;;  %v1145_v13 = vld [vmem:[%s1337_s20 + $0x60] sm:$0xff]   ;;  %v1139_v15 = vld [vmem:[%s1337_s20 + $0x30] sm:$0xff]  }
  0x1e   : > { %993 = vmatprep.mubr.msk.bf16.mxu1 %vm423_vm1, %v1143_v9  ;;  %v1146_v16 = vld [vmem:[%s1337_s20 + $0x68] sm:$0xff]   ;;  %v1147_v17 = vld [vmem:[%s1337_s20 + $0x70] sm:$0xff]   ;;  %v1140_v18 = vld [vmem:[%s1337_s20 + $0x38] sm:$0xff]   ;;  %1042 = vmatpush3.bf16.msra.mxu1 %v1041_v22 }
  0x1f   : > { %v1148_v19 = vld [vmem:[%s1337_s20 + $0x78] sm:$0xff]   ;;  %1043 = vmatprep.subr.bf16.mxu1 %v1229_v23  ;;  %s1149_s20 = scalar_lea.vmem %s1484_s15, 16 }
  0x20   : > { %p1150_p12 = scmp.ne.s32.totalorder %s1484_s15, %s1149_s20  ;;  %p1157_p2 = scmp.lt.s32.totalorder %s1155_s27, %s1149_s20 }
  0x22   : > { %1045 = vmatpush3.bf16.msra.mxu1 %v1044_v26  ;;  %p1151_p13 = pnand %p1150_p12, %p1308_p4  ;;  %p1158_p3 = por %p1157_p2, %p1156_p1 }
  0x23   : > { %1046 = vmatprep.subr.bf16.mxu1 %v1229_v23 }
  0x24   : > { %978 = vmatmul.mubr.msk.bf16.gmra.mrb[4].mxu0 %vm423_vm1, %v1136_v10  ;;  %p1152_p0 = pneg %p1151_p13 }
  0x25   : > { %981 = vmatprep.mubr.msk.bf16.mxu0 %vm423_vm1, %v1137_v11  ;;  %994 = vmatmul.mubr.msk.bf16.gmra.mrb[4].mxu1 %vm423_vm1, %v1144_v12 }
  0x26   : > { %997 = vmatprep.mubr.msk.bf16.mxu1 %vm423_vm1, %v1145_v13  ;;  %1048 = vmatpush3.bf16.msra.mxu1 %v1047_v29  ;;  %p1159_p5 = pnand %p1158_p3, %p1152_p0 }
  0x27   : > { %1049 = vmatprep.subr.bf16.mxu1 %v1229_v23 }
  0x2a   : > { %1051 = vmatpush3.bf16.msra.mxu1 %v1050_v32 }
  0x2b   : > { %1052 = vmatprep.subr.bf16.mxu1 %v1229_v23 }
  0x2c   : > { %982 = vmatmul.mubr.msk.bf16.gmra.mrb[8].mxu0 %vm423_vm1, %v1138_v14 }
  0x2d   : > { %985 = vmatprep.mubr.msk.bf16.mxu0 %vm423_vm1, %v1139_v15  ;;  %998 = vmatmul.mubr.msk.bf16.gmra.mrb[8].mxu1 %vm423_vm1, %v1146_v16 }
  0x2e   : > { %1001 = vmatprep.mubr.msk.bf16.mxu1 %vm423_vm1, %v1147_v17  ;;  %1054 = vmatpush3.bf16.msra.mxu1 %v1053_v36 }
  0x2f   : > { %1055 = vmatprep.subr.bf16.mxu1 %v1229_v23 }
  0x32   : > { %1057 = vmatpush3.bf16.msra.mxu1 %v1056_v39 }
  0x33   : > { %1058 = vmatprep.subr.bf16.mxu1 %v1229_v23 }
  0x34   : > { %986 = vmatmul.mubr.msk.bf16.gmra.mrb[12].mxu0 %vm423_vm1, %v1140_v18 }
  0x35   : > { %1002 = vmatmul.mubr.msk.bf16.gmra.mrb[12].mxu1 %vm423_vm1, %v1148_v19 }
  0x36   : > { %1037 = vmatprep.mubr.msk.f32.mxu1 %vm1231_vm2, %v1230_v33  ;;  %1060 = vmatpush3.bf16.msra.mxu1 %v1059_v42 }
  0x37   : > { %1061 = vmatprep.subr.bf16.mxu1 %v1229_v23 }
  0x3a   : > { %1063 = vmatpush3.bf16.msra.mxu1 %v1062_v45 }
  0xef   : > { %v975_v47 = vpop.f32.mrb[0].mxu0 }
  0xf0   : > { %v510_v48 = vpop.f32.mrb[1].mxu0  ;;  %v519_v52 = vadd.f32 %v975_v47, %v1422_v46  ;;  %v1427_v54 = vpop.f32.mrb[0].mxu1 }
  0xf1   : > { %v511_v49 = vadd.f32 %v1422_v46, %v510_v48  ;;  %v976_v50 = vpop.f32.mrb[2].mxu0  ;;  %v1429_v55 = vpop.f32.mrb[1].mxu1 }
  0xf2   : > { %v513_v51 = vpop.f32.mrb[3].mxu0  ;;  %v522_v57 = vadd.f32 %v976_v50, %v1422_v46  ;;  %v1432_v59 = vpop.f32.mrb[2].mxu1  ;;  %v639_v61 = vmax.f32 %v519_v52, 0.0 }
  0xf3   : > { %v514_v53 = vadd.f32 %v1422_v46, %v513_v51  ;;  %v637_v56 = vmax.f32 %v511_v49, 0.0  ;;  %v1434_v60 = vpop.f32.mrb[3].mxu1 }
  0xf4   : > { %v640_v1 = vmax.f32 %v522_v57, 0.0 }
  0xf5   : > { %v638_v58 = vmax.f32 %v514_v53, 0.0 }
  0xf7   : > { %v670_v62 = vadd.f32 %v638_v58, %v637_v56  ;;  %v979_v63 = vpop.f32.mrb[4].mxu0  ;;  %v575_v58 = vadd.f32 %v1422_v46, %v1429_v55 }
  0xf8   : > { %v526_v0 = vpop.f32.mrb[5].mxu0  ;;  %v535_v6 = vadd.f32 %v979_v63, %v1422_v46  ;;  %v1439_v10 = vpop.f32.mrb[4].mxu1 }
  0xf9   : > { %v671_v2 = vadd.f32 %v670_v62, %v639_v61  ;;  %v527_v3 = vadd.f32 %v1422_v46, %v526_v0  ;;  %v980_v4 = vpop.f32.mrb[6].mxu0  ;;  %v590_v11 = vpop.f32.mrb[5].mxu1 }
  0xfa   : > { %v529_v5 = vpop.f32.mrb[7].mxu0  ;;  %v538_v13 = vadd.f32 %v980_v4, %v1422_v46  ;;  %v1442_v15 = vpop.f32.mrb[6].mxu1  ;;  %v643_v17 = vmax.f32 %v535_v6, 0.0  ;;  %v578_v4 = vadd.f32 %v1422_v46, %v1434_v60  ;;  %v591_v55 = vadd.f32 %v1422_v46, %v590_v11 }
  0xfb   : > { %v641_v7 = vmax.f32 %v527_v3, 0.0  ;;  %v672_v8 = vadd.f32 %v671_v2, %v640_v1  ;;  %v530_v9 = vadd.f32 %v1422_v46, %v529_v5  ;;  %v593_v16 = vpop.f32.mrb[7].mxu1  ;;  %v653_v3 = vmax.f32 %v575_v58, 0.0 }
  0xfc   : > { %v644_v21 = vmax.f32 %v538_v13, 0.0  ;;  %v583_v5 = vadd.f32 %v1427_v54, %v1422_v46  ;;  %v599_v60 = vadd.f32 %v1439_v10, %v1422_v46 }
  0xfd   : > { %v673_v12 = vadd.f32 %v672_v8, %v641_v7  ;;  %v642_v14 = vmax.f32 %v530_v9, 0.0  ;;  %v586_v8 = vadd.f32 %v1432_v59, %v1422_v46  ;;  %v654_v9 = vmax.f32 %v578_v4, 0.0 }
  0xff   : > { %v674_v18 = vadd.f32 %v673_v12, %v642_v14  ;;  %v983_v19 = vpop.f32.mrb[8].mxu0  ;;  %v655_v12 = vmax.f32 %v583_v5, 0.0  ;;  %v656_v14 = vmax.f32 %v586_v8, 0.0 }
 0x100   : > { %v542_v20 = vpop.f32.mrb[9].mxu0  ;;  %v551_v26 = vadd.f32 %v983_v19, %v1422_v46  ;;  %v999_v30 = vpop.f32.mrb[8].mxu1  ;;  %v594_v19 = vadd.f32 %v1422_v46, %v593_v16 }
 0x101   : > { %v675_v22 = vadd.f32 %v674_v18, %v643_v17  ;;  %v543_v23 = vadd.f32 %v1422_v46, %v542_v20  ;;  %v984_v24 = vpop.f32.mrb[10].mxu0  ;;  %v606_v31 = vpop.f32.mrb[9].mxu1  ;;  %v657_v18 = vmax.f32 %v591_v55, 0.0  ;;  %v615_v16 = vadd.f32 %v999_v30, %v1422_v46 }
 0x102   : > { %v545_v25 = vpop.f32.mrb[11].mxu0  ;;  %v554_v33 = vadd.f32 %v984_v24, %v1422_v46  ;;  %v1000_v35 = vpop.f32.mrb[10].mxu1  ;;  %v647_v37 = vmax.f32 %v551_v26, 0.0  ;;  %v607_v59 = vadd.f32 %v1422_v46, %v606_v31 }
 0x103   : > { %v645_v27 = vmax.f32 %v543_v23, 0.0  ;;  %v676_v28 = vadd.f32 %v675_v22, %v644_v21  ;;  %v546_v29 = vadd.f32 %v1422_v46, %v545_v25  ;;  %v609_v36 = vpop.f32.mrb[11].mxu1  ;;  %v602_v21 = vadd.f32 %v1442_v15, %v1422_v46 }
 0x104   : > { %v648_v41 = vmax.f32 %v554_v33, 0.0  ;;  %v658_v22 = vmax.f32 %v594_v19, 0.0  ;;  %v659_v23 = vmax.f32 %v599_v60, 0.0  ;;  %v661_v26 = vmax.f32 %v607_v59, 0.0 }
 0x105   : > { %v677_v32 = vadd.f32 %v676_v28, %v645_v27  ;;  %v646_v34 = vmax.f32 %v546_v29, 0.0  ;;  %v660_v24 = vmax.f32 %v602_v21, 0.0  ;;  %v610_v27 = vadd.f32 %v1422_v46, %v609_v36 }
 0x106   : > { %v618_v10 = vadd.f32 %v1000_v35, %v1422_v46  ;;  %v663_v15 = vmax.f32 %v615_v16, 0.0 }
 0x107   : > { %v678_v38 = vadd.f32 %v677_v32, %v646_v34  ;;  %v987_v39 = vpop.f32.mrb[12].mxu0  ;;  %v662_v32 = vmax.f32 %v610_v27, 0.0 }
 0x108   : > { %v558_v40 = vpop.f32.mrb[13].mxu0  ;;  %v567_v47 = vadd.f32 %v987_v39, %v1422_v46  ;;  %v1003_v51 = vpop.f32.mrb[12].mxu1 }
 0x109   : > { %v679_v42 = vadd.f32 %v678_v38, %v647_v37  ;;  %v559_v43 = vadd.f32 %v1422_v46, %v558_v40  ;;  %v988_v44 = vpop.f32.mrb[14].mxu0  ;;  %v622_v52 = vpop.f32.mrb[13].mxu1  ;;  %v664_v37 = vmax.f32 %v618_v10, 0.0  ;;  %v631_v40 = vadd.f32 %v1003_v51, %v1422_v46 }
 0x10a   : > { %v561_v45 = vpop.f32.mrb[15].mxu0  ;;  %v570_v56 = vadd.f32 %v988_v44, %v1422_v46  ;;  %v1004_v61 = vpop.f32.mrb[14].mxu1  ;;  %v651_v63 = vmax.f32 %v567_v47, 0.0  ;;  %v623_v33 = vadd.f32 %v1422_v46, %v622_v52 }
 0x10b   : > { %v649_v48 = vmax.f32 %v559_v43, 0.0  ;;  %v680_v49 = vadd.f32 %v679_v42, %v648_v41  ;;  %v562_v50 = vadd.f32 %v1422_v46, %v561_v45  ;;  %v625_v62 = vpop.f32.mrb[15].mxu1  ;;  %v634_v30 = vadd.f32 %v1004_v61, %v1422_v46 }
 0x10c   : > { %v652_v1 = vmax.f32 %v570_v56, 0.0  ;;  %v665_v38 = vmax.f32 %v623_v33, 0.0  ;;  %v626_v39 = vadd.f32 %v1422_v46, %v625_v62  ;;  %v667_v43 = vmax.f32 %v631_v40, 0.0  ;;  %v669_v56 = vld [vmem:[#allocation2] sm:$0x1] }
 0x10d   : > { %v681_v53 = vadd.f32 %v680_v49, %v649_v48  ;;  %v650_v57 = vmax.f32 %v562_v50, 0.0  ;;  %v668_v35 = vmax.f32 %v634_v30, 0.0  ;;  %v730_v46 = vld [vmem:[%s1534_s5] sm:$0x1] }
 0x10e   : > { %v666_v42 = vmax.f32 %v626_v39, 0.0 }
 0x10f   : > { %v682_v0 = vadd.f32 %v681_v53, %v650_v57 }
 0x111   : > { %v683_v2 = vadd.f32 %v682_v0, %v651_v63 }
 0x113   : > { %v684_v6 = vadd.f32 %v683_v2, %v652_v1 }
 0x115   : > { %v685_v7 = vadd.f32 %v684_v6, %v653_v3 }
 0x117   : > { %v686_v13 = vadd.f32 %v685_v7, %v654_v9 }
 0x119   : > { %v687_v17 = vadd.f32 %v686_v13, %v655_v12 }
 0x11b   : > { %v688_v20 = vadd.f32 %v687_v17, %v656_v14 }
 0x11d   : > { %v689_v54 = vadd.f32 %v688_v20, %v657_v18 }
 0x11f   : > { %v690_v11 = vadd.f32 %v689_v54, %v658_v22 }
 0x121   : > { %v691_v25 = vadd.f32 %v690_v11, %v659_v23 }
 0x123   : > { %v692_v28 = vadd.f32 %v691_v25, %v660_v24 }
 0x125   : > { %v693_v29 = vadd.f32 %v692_v28, %v661_v26 }
 0x127   : > { %v694_v34 = vadd.f32 %v693_v29, %v662_v32 }
 0x129   : > { %v695_v31 = vadd.f32 %v694_v34, %v663_v15 }
 0x12b   : > { %v696_v41 = vadd.f32 %v695_v31, %v664_v37 }
 0x12d   : > { %v697_v36 = vadd.f32 %v696_v41, %v665_v38 }
 0x12f   : > { %v698_v44 = vadd.f32 %v697_v36, %v666_v42 }
 0x131   : > { %v699_v45 = vadd.f32 %v698_v44, %v667_v43 }
 0x133   : > { %v700_v47 = vadd.f32 %v699_v45, %v668_v35 }
 0x135   : > { %v701_v48 = vrot.slane %v700_v47, 4 }
 0x137   : > { %v702_v49 = vadd.f32 %v701_v48, %v700_v47 }
 0x139   : > { %v703_v50 = vrot.slane %v702_v49, 2 }
 0x13b   : > { %v704_v52 = vadd.f32 %v703_v50, %v702_v49 }
 0x13d   : > { %v705_v53 = vrot.slane %v704_v52, 1 }
 0x13f   : > { %v706_v57 = vadd.f32 %v705_v53, %v704_v52 }
 0x141   : > { %v707_v51 = vadd.f32 %v706_v57, %v669_v56 }
 0x143   : > { %708 = vst [vmem:[#allocation2] sm:$0x1] %v707_v51 }
 0x14a   : > { %v712_v58 = vld [vmem:[#allocation2] sm:$0x1] }
 0x14b   : > { %v713_v62 = vmul.f32 0.00390625, %v712_v58 }
 0x14d   : > { %1038 = vmatmul.mubr.f32.vlgmr.msra.gmra.mrb[16].mxu1 %v713_v62 }
 0x220   : > { %v797_v61 = vpop.f32.mrb[16].mxu1 }
 0x221   : > { %v798_v63 = vadd.f32 %v797_v61, %v730_v46  ;;  %v1039_v0 = vpop.f32.mrb[17].mxu1 }
 0x223   : > { %801 = vst [vmem:[%s267_s14] sm:$0x1] %v798_v63 }
 0x224   : > { %1162 = shalt.err (!%p1159_p5)
}
 0x225   : > { %s1163_s29 = scalar_lea.hbm %s1482_s18, 16  ;;  %s1167_s11 = scalar_lea.hbm %s1535_s6, 32 }
 0x226   : > { %p1164_p6 = scmp.ne.s32.totalorder %s1482_s18, %s1163_s29  ;;  %p1168_p10 = scmp.lt.u32.totalorder %s1482_s18, %s1535_s6 }
 0x227   : > { %p1169_p11 = scmp.lt.u32.totalorder %s1167_s11, %s1163_s29  ;;  %p1171_p13 = scmp.lt.u32.totalorder %s1163_s29, %s1482_s18 }
 0x228   : > { %p1165_p7 = pnand %p1164_p6, %p1308_p4 }
 0x229   : > { %p1170_p12 = por %p1169_p11, %p1168_p10 }
 0x22a   : > { %p1166_p9 = pneg %p1165_p7 }
 0x22b   : > { %p1172_p0 = por %p1171_p13, %p1170_p12 }
 0x22d   : > { %p1173_p1 = pnand %p1172_p0, %p1166_p9 }
 0x22f   : > { %1176 = shalt.err (!%p1173_p1)
}
 0x230   : > { %1072 = dma.vmem_to_hbm [thread:$0]  (%p1308_p4), %s1484_s15, 16, %s1482_s18, %s803_s19  }
 0x231 PF: > { %p1078_p2 = scmp.ge.s32.totalorder %s1227_s25, 2  ;;  %s827_s14 = sand.u32 1, %s1207_s0  }
 0x232   : > { %s828_s16 = scalar_lea.sflag [#allocation5], %s827_s14 }
 0x233   : > { %p1075_p3 = pnand %p1078_p2, %p1315_p8 }
 0x235   : > { %1202 = dma.done.wait (!%p1075_p3), %s828_s16, 16  }
 0x236   : > { %1204 = vsyncadd (!%p1075_p3), %s828_s16, 4294967280  ;;  %s20_s25 = sadd.s32 1, %s1227_s25   ;;  %s1538_s0 = smov %s1211_s21 }
 0x237   : > { %p17_p5 = scmp.ge.s32.totalorder %s20_s25, 4   ;;  %s1539_s21 = smov %s1215_s22 }
 0x238   : > { %s1540_s22 = smov %s1321_s9  ;;  %s1541_s23 = smov %s1223_s24 }
 0x239   : > { %s1542_s24 = smov %s1544_s28  ;;  %19 = sbr.rel (!%p17_p5) target bundleno = 4 (0x4), region = 87 }
 0x240   :  { %832 = vsyncpa [#allocation5], 1 }
 0x241   :  { %834 = vsyncpa [#allocation5 + $0x1], 1 }

</bundles_post_ra>
